<compile_context>
chip_gen: v6e
topology: v6e:2x2x1
jax: 0.10.0
libtpu: 0.0.40
codegen_flags: <defaults>
</compile_context>

<pallas_src>
import jax
import jax.numpy as jnp
from jax.experimental import pallas as pl
from jax.experimental.pallas import tpu as pltpu

LANE = 128
SUBLANE = 8
MAX_TILE_B = 256  # MXU M-occupancy target (>=128 for v5e, >=256 for v6e/v7x)


def _round_up(x, m):
    return ((x + m - 1) // m) * m


def _actor_mlp_kernel(x_ref, w1_ref, b1_ref, w2_ref, b2_ref, w3_ref, b3_ref,
                      w4_ref, b4_ref, means_ref):
    # Weights arrive as bf16 (half the DMA bytes); upcast on-chip, accumulate
    # in f32 on the MXU.  ReLU / tanh run on VPU / EUP slots that are idle
    # relative to the MXU, so the whole body is memory/launch bound.
    f32 = jnp.float32
    h = jnp.dot(x_ref[...], w1_ref[...].astype(f32),
                preferred_element_type=f32) + b1_ref[...]
    h = jnp.maximum(h, 0.0)
    h = jnp.dot(h, w2_ref[...].astype(f32),
                preferred_element_type=f32) + b2_ref[...]
    h = jnp.maximum(h, 0.0)
    h = jnp.dot(h, w3_ref[...].astype(f32),
                preferred_element_type=f32) + b3_ref[...]
    h = jnp.maximum(h, 0.0)
    h = jnp.dot(h, w4_ref[...].astype(f32),
                preferred_element_type=f32) + b4_ref[...]
    means_ref[...] = jnp.tanh(h)


def init_params(key, state_dim, n_actions, std):
    """Raw f32 parameters matching the PyTorch module's Linear layers (as (in, out))."""
    sizes = [(state_dim, 512), (512, 256), (256, 64), (64, n_actions)]
    params = []
    for fan_in, fan_out in sizes:
        kw, kb, key = jax.random.split(key, 3)
        bound = 1.0 / float(fan_in) ** 0.5
        w = jax.random.uniform(kw, (fan_in, fan_out), jnp.float32, -bound, bound)
        b = jax.random.uniform(kb, (fan_out,), jnp.float32, -bound, bound)
        params += [w, b]
    # self.std = nn.Parameter(torch.full((n_actions,), std))
    logstd = jnp.full((n_actions,), std, dtype=jnp.float32)
    params.append(logstd)
    return tuple(params)


def prepare_params(params, weight_dtype=jnp.bfloat16):
    """One-time (off hot path) parameter preparation:
       bf16 weights, (1, dim) f32 bias rows, lane-padded last layer,
       precomputed clamped stds."""
    w1, b1, w2, b2, w3, b3, w4, b4, logstd = params
    n_actions = w4.shape[1]
    n_pad = _round_up(max(n_actions, LANE), LANE)
    w4p = jnp.zeros((w4.shape[0], n_pad), w4.dtype).at[:, :n_actions].set(w4)
    b4p = jnp.zeros((n_pad,), b4.dtype).at[:n_actions].set(b4)
    # matches torch.clamp(self.std.exp(), 0.001, 50)
    stds = jnp.clip(jnp.exp(logstd), 0.001, 50.0)
    cast = lambda w: w.astype(weight_dtype)
    row = lambda b: b.reshape(1, -1).astype(jnp.float32)
    return dict(
        weights=(cast(w1), row(b1), cast(w2), row(b2),
                 cast(w3), row(b3), cast(w4p), row(b4p)),
        stds=stds,
        n_actions=n_actions,
        n_pad=n_pad,
    )


def actor_best_forward(x, prepared):
    """Returns (means, stds) — the parameters of the Normal the PyTorch module builds."""
    # TODO(synk): torch.distributions.Normal itself has no Pallas equivalent; we
    # return the (means, stds) pair that fully parameterizes it.
    w1, b1, w2, b2, w3, b3, w4, b4 = prepared["weights"]
    stds = prepared["stds"]
    n_actions = prepared["n_actions"]
    n_pad = prepared["n_pad"]

    batch, state_dim = x.shape
    tile_b = min(MAX_TILE_B, _round_up(batch, SUBLANE))
    b_pad = _round_up(batch, tile_b)
    x = x.astype(jnp.float32)
    if b_pad != batch:
        x = jnp.pad(x, ((0, b_pad - batch), (0, 0)))

    h1, h2, h3 = w1.shape[1], w2.shape[1], w3.shape[1]

    flops = 2 * b_pad * (state_dim * h1 + h1 * h2 + h2 * h3 + h3 * n_pad)
    bytes_accessed = (
        x.size * x.dtype.itemsize
        + sum(a.size * a.dtype.itemsize for a in prepared["weights"])
        + b_pad * n_pad * 4
    )
    cost = pl.CostEstimate(flops=flops,
                           transcendentals=b_pad * n_pad,
                           bytes_accessed=bytes_accessed)

    const = lambda i: (0, 0)  # weights/biases: fetched once, VMEM-resident across steps
    grid_spec = pltpu.PrefetchScalarGridSpec(
        num_scalar_prefetch=0,
        grid=(b_pad // tile_b,),
        in_specs=[
            pl.BlockSpec((tile_b, state_dim), lambda i: (i, 0)),  # x: batch-tiled
            pl.BlockSpec((state_dim, h1), const),
            pl.BlockSpec((1, h1), const),
            pl.BlockSpec((h1, h2), const),
            pl.BlockSpec((1, h2), const),
            pl.BlockSpec((h2, h3), const),
            pl.BlockSpec((1, h3), const),
            pl.BlockSpec((h3, n_pad), const),
            pl.BlockSpec((1, n_pad), const),
        ],
        out_specs=pl.BlockSpec((tile_b, n_pad), lambda i: (i, 0)),  # lane-dense store
    )

    means_pad = pl.pallas_call(
        _actor_mlp_kernel,
        out_shape=jax.ShapeDtypeStruct((b_pad, n_pad), jnp.float32),
        grid_spec=grid_spec,
        compiler_params=pltpu.CompilerParams(
            dimension_semantics=("parallel",),  # batch axis -> both TCs on v7x
        ),
        cost_estimate=cost,
    )(x, w1, b1, w2, b2, w3, b3, w4, b4)

    return means_pad[:batch, :n_actions], stds


def reference_forward(x, prepared):
    """Pure-JAX reference using the same (bf16-quantized, padded) parameters."""
    hp = jax.lax.Precision.HIGHEST
    w1, b1, w2, b2, w3, b3, w4, b4 = [a.astype(jnp.float32) for a in prepared["weights"]]
    n_actions = prepared["n_actions"]
    h = jnp.maximum(jnp.dot(x, w1, precision=hp) + b1, 0.0)
    h = jnp.maximum(jnp.dot(h, w2, precision=hp) + b2, 0.0)
    h = jnp.maximum(jnp.dot(h, w3, precision=hp) + b3, 0.0)
    means = jnp.tanh(jnp.dot(h, w4, precision=hp) + b4)[:, :n_actions]
    return means, prepared["stds"]


if __name__ == "__main__":
    key = jax.random.PRNGKey(0)
    batch, state_dim, n_actions, std = 8, 32, 4, 0.5

    kx, kp, kx2 = jax.random.split(key, 3)
    x = jax.random.normal(kx, (batch, state_dim), dtype=jnp.float32)
    raw_params = init_params(kp, state_dim, n_actions, std)
    prepared = prepare_params(raw_params)

    means, stds = jax.block_until_ready(actor_best_forward(x, prepared))
    means_ref, stds_ref = reference_forward(x, prepared)
    assert means.shape == (batch, n_actions)
    assert stds.shape == (n_actions,)
    assert jnp.allclose(means, means_ref, atol=1e-4, rtol=1e-4)
    assert jnp.allclose(stds, stds_ref)

    # Larger batch exercises the batch-tiled grid (multiple grid steps + padding).
    big_batch = 300
    x_big = jax.random.normal(kx2, (big_batch, state_dim), dtype=jnp.float32)
    means_b, _ = jax.block_until_ready(actor_best_forward(x_big, prepared))
    means_b_ref, _ = reference_forward(x_big, prepared)
    assert means_b.shape == (big_batch, n_actions)
    assert jnp.allclose(means_b, means_b_ref, atol=1e-4, rtol=1e-4)

    print("KERNEL_OK")
</pallas_src>

<mosaic_0001>
module attributes {stable_mosaic.version = 11 : i64} {
  func.func @_actor_mlp_kernel(%arg0: i32, %arg1: memref<8x32xf32, #tpu.memory_space<vmem>>, %arg2: memref<32x512xbf16, #tpu.memory_space<vmem>>, %arg3: memref<1x512xf32, #tpu.memory_space<vmem>>, %arg4: memref<512x256xbf16, #tpu.memory_space<vmem>>, %arg5: memref<1x256xf32, #tpu.memory_space<vmem>>, %arg6: memref<256x64xbf16, #tpu.memory_space<vmem>>, %arg7: memref<1x64xf32, #tpu.memory_space<vmem>>, %arg8: memref<64x128xbf16, #tpu.memory_space<vmem>>, %arg9: memref<1x128xf32, #tpu.memory_space<vmem>>, %arg10: memref<8x128xf32, #tpu.memory_space<vmem>>) attributes {dimension_semantics = [#tpu.dimension_semantics<parallel>], iteration_bounds = array<i64: 1>, scalar_prefetch = 0 : i64, scratch_operands = 0 : i64, tpu.core_type = #tpu.core_type<tc>, window_params = [{transform_indices = @transform_0, window_bounds = array<i64: 8, 32>}, {pipeline_mode = #tpu.pipeline_mode<synchronous>, transform_indices = @transform_1, window_bounds = array<i64: 32, 512>}, {pipeline_mode = #tpu.pipeline_mode<synchronous>, transform_indices = @transform_2, window_bounds = array<i64: 1, 512>}, {pipeline_mode = #tpu.pipeline_mode<synchronous>, transform_indices = @transform_3, window_bounds = array<i64: 512, 256>}, {pipeline_mode = #tpu.pipeline_mode<synchronous>, transform_indices = @transform_4, window_bounds = array<i64: 1, 256>}, {pipeline_mode = #tpu.pipeline_mode<synchronous>, transform_indices = @transform_5, window_bounds = array<i64: 256, 64>}, {pipeline_mode = #tpu.pipeline_mode<synchronous>, transform_indices = @transform_6, window_bounds = array<i64: 1, 64>}, {pipeline_mode = #tpu.pipeline_mode<synchronous>, transform_indices = @transform_7, window_bounds = array<i64: 64, 128>}, {pipeline_mode = #tpu.pipeline_mode<synchronous>, transform_indices = @transform_8, window_bounds = array<i64: 1, 128>}, {transform_indices = @transform_9, window_bounds = array<i64: 8, 128>}]} {
    %c0 = arith.constant 0 : index
    %c0_0 = arith.constant 0 : index
    %0 = vector.load %arg1[%c0, %c0_0] : memref<8x32xf32, #tpu.memory_space<vmem>>, vector<8x32xf32>
    %c0_1 = arith.constant 0 : index
    %c0_2 = arith.constant 0 : index
    %1 = vector.load %arg2[%c0_1, %c0_2] : memref<32x512xbf16, #tpu.memory_space<vmem>>, vector<32x512xbf16>
    %2 = arith.extf %1 : vector<32x512xbf16> to vector<32x512xf32>
    %cst = arith.constant dense<0.000000e+00> : vector<8x512xf32>
    %3 = tpu.matmul %0, %2, %cst {dimension_numbers = #tpu.dot_dimension_numbers<[1], [0], [0], [1], [0, 0, 1, 1], [], []>} : vector<8x32xf32>, vector<32x512xf32>, vector<8x512xf32> -> vector<8x512xf32>
    %c0_3 = arith.constant 0 : index
    %c0_4 = arith.constant 0 : index
    %4 = vector.load %arg3[%c0_3, %c0_4] : memref<1x512xf32, #tpu.memory_space<vmem>>, vector<1x512xf32>
    %5 = vector.broadcast %4 : vector<1x512xf32> to vector<8x512xf32>
    %6 = arith.addf %3, %5 : vector<8x512xf32>
    %cst_5 = arith.constant 0.000000e+00 : f32
    %7 = vector.broadcast %cst_5 : f32 to vector<8x512xf32>
    %8 = arith.maximumf %6, %7 : vector<8x512xf32>
    %c0_6 = arith.constant 0 : index
    %c0_7 = arith.constant 0 : index
    %9 = vector.load %arg4[%c0_6, %c0_7] : memref<512x256xbf16, #tpu.memory_space<vmem>>, vector<512x256xbf16>
    %10 = arith.extf %9 : vector<512x256xbf16> to vector<512x256xf32>
    %cst_8 = arith.constant dense<0.000000e+00> : vector<8x256xf32>
    %11 = tpu.matmul %8, %10, %cst_8 {dimension_numbers = #tpu.dot_dimension_numbers<[1], [0], [0], [1], [0, 0, 1, 1], [], []>} : vector<8x512xf32>, vector<512x256xf32>, vector<8x256xf32> -> vector<8x256xf32>
    %c0_9 = arith.constant 0 : index
    %c0_10 = arith.constant 0 : index
    %12 = vector.load %arg5[%c0_9, %c0_10] : memref<1x256xf32, #tpu.memory_space<vmem>>, vector<1x256xf32>
    %13 = vector.broadcast %12 : vector<1x256xf32> to vector<8x256xf32>
    %14 = arith.addf %11, %13 : vector<8x256xf32>
    %cst_11 = arith.constant 0.000000e+00 : f32
    %15 = vector.broadcast %cst_11 : f32 to vector<8x256xf32>
    %16 = arith.maximumf %14, %15 : vector<8x256xf32>
    %c0_12 = arith.constant 0 : index
    %c0_13 = arith.constant 0 : index
    %17 = vector.load %arg6[%c0_12, %c0_13] : memref<256x64xbf16, #tpu.memory_space<vmem>>, vector<256x64xbf16>
    %18 = arith.extf %17 : vector<256x64xbf16> to vector<256x64xf32>
    %cst_14 = arith.constant dense<0.000000e+00> : vector<8x64xf32>
    %19 = tpu.matmul %16, %18, %cst_14 {dimension_numbers = #tpu.dot_dimension_numbers<[1], [0], [0], [1], [0, 0, 1, 1], [], []>} : vector<8x256xf32>, vector<256x64xf32>, vector<8x64xf32> -> vector<8x64xf32>
    %c0_15 = arith.constant 0 : index
    %c0_16 = arith.constant 0 : index
    %20 = vector.load %arg7[%c0_15, %c0_16] : memref<1x64xf32, #tpu.memory_space<vmem>>, vector<1x64xf32>
    %21 = vector.broadcast %20 : vector<1x64xf32> to vector<8x64xf32>
    %22 = arith.addf %19, %21 : vector<8x64xf32>
    %cst_17 = arith.constant 0.000000e+00 : f32
    %23 = vector.broadcast %cst_17 : f32 to vector<8x64xf32>
    %24 = arith.maximumf %22, %23 : vector<8x64xf32>
    %c0_18 = arith.constant 0 : index
    %c0_19 = arith.constant 0 : index
    %25 = vector.load %arg8[%c0_18, %c0_19] : memref<64x128xbf16, #tpu.memory_space<vmem>>, vector<64x128xbf16>
    %26 = arith.extf %25 : vector<64x128xbf16> to vector<64x128xf32>
    %cst_20 = arith.constant dense<0.000000e+00> : vector<8x128xf32>
    %27 = tpu.matmul %24, %26, %cst_20 {dimension_numbers = #tpu.dot_dimension_numbers<[1], [0], [0], [1], [0, 0, 1, 1], [], []>} : vector<8x64xf32>, vector<64x128xf32>, vector<8x128xf32> -> vector<8x128xf32>
    %c0_21 = arith.constant 0 : index
    %c0_22 = arith.constant 0 : index
    %28 = vector.load %arg9[%c0_21, %c0_22] : memref<1x128xf32, #tpu.memory_space<vmem>>, vector<1x128xf32>
    %29 = vector.broadcast %28 : vector<1x128xf32> to vector<8x128xf32>
    %30 = arith.addf %27, %29 : vector<8x128xf32>
    %31 = math.tanh %30 : vector<8x128xf32>
    %c0_23 = arith.constant 0 : index
    %c0_24 = arith.constant 0 : index
    %32 = vector.load %arg10[%c0_23, %c0_24] : memref<8x128xf32, #tpu.memory_space<vmem>>, vector<8x128xf32>
    tpu.vector_store %arg10[%c0_23, %c0_24], %31 {strides = array<i32>} : memref<8x128xf32, #tpu.memory_space<vmem>>, vector<8x128xf32>,
    return
  }
  func.func @transform_0(%arg0: i32) -> (i32, i32) {
    %c0_i32 = arith.constant 0 : i32
    %c0_i32_0 = arith.constant 0 : i32
    return %arg0, %c0_i32 : i32, i32
  }
  func.func @transform_1(%arg0: i32) -> (i32, i32) {
    %c0_i32 = arith.constant 0 : i32
    %c0_i32_0 = arith.constant 0 : i32
    %c0_i32_1 = arith.constant 0 : i32
    return %c0_i32, %c0_i32_0 : i32, i32
  }
  func.func @transform_2(%arg0: i32) -> (i32, i32) {
    %c0_i32 = arith.constant 0 : i32
    %c0_i32_0 = arith.constant 0 : i32
    %c0_i32_1 = arith.constant 0 : i32
    return %c0_i32, %c0_i32_0 : i32, i32
  }
  func.func @transform_3(%arg0: i32) -> (i32, i32) {
    %c0_i32 = arith.constant 0 : i32
    %c0_i32_0 = arith.constant 0 : i32
    %c0_i32_1 = arith.constant 0 : i32
    return %c0_i32, %c0_i32_0 : i32, i32
  }
  func.func @transform_4(%arg0: i32) -> (i32, i32) {
    %c0_i32 = arith.constant 0 : i32
    %c0_i32_0 = arith.constant 0 : i32
    %c0_i32_1 = arith.constant 0 : i32
    return %c0_i32, %c0_i32_0 : i32, i32
  }
  func.func @transform_5(%arg0: i32) -> (i32, i32) {
    %c0_i32 = arith.constant 0 : i32
    %c0_i32_0 = arith.constant 0 : i32
    %c0_i32_1 = arith.constant 0 : i32
    return %c0_i32, %c0_i32_0 : i32, i32
  }
  func.func @transform_6(%arg0: i32) -> (i32, i32) {
    %c0_i32 = arith.constant 0 : i32
    %c0_i32_0 = arith.constant 0 : i32
    %c0_i32_1 = arith.constant 0 : i32
    return %c0_i32, %c0_i32_0 : i32, i32
  }
  func.func @transform_7(%arg0: i32) -> (i32, i32) {
    %c0_i32 = arith.constant 0 : i32
    %c0_i32_0 = arith.constant 0 : i32
    %c0_i32_1 = arith.constant 0 : i32
    return %c0_i32, %c0_i32_0 : i32, i32
  }
  func.func @transform_8(%arg0: i32) -> (i32, i32) {
    %c0_i32 = arith.constant 0 : i32
    %c0_i32_0 = arith.constant 0 : i32
    %c0_i32_1 = arith.constant 0 : i32
    return %c0_i32, %c0_i32_0 : i32, i32
  }
  func.func @transform_9(%arg0: i32) -> (i32, i32) {
    %c0_i32 = arith.constant 0 : i32
    %c0_i32_0 = arith.constant 0 : i32
    return %arg0, %c0_i32 : i32, i32
  }
}

</mosaic_0001>

<bundles_post_ra>
// kernel: tpu_custom_call.1
= control target key start
LH: loop header
LB: loop body
LE: loop exit
PB: predicated region body
PF: predicated region fallthrough
CT: control target
= control target key end

     0   :  { %14 = vsyncpa [#allocation3], 0  ;;  %s1254_s0 = inlined_call_operand.vmem [shape: f32[8,32], index: 0, kind: input, shape index: {}]   ;;  %s1255_s1 = inlined_call_operand.vmem [shape: bf16[32,512], index: 1, kind: input, shape index: {}]   ;;  %s1256_s2 = inlined_call_operand.vmem [shape: f32[1,512], index: 2, kind: input, shape index: {}]   ;;  %s1257_s3 = inlined_call_operand.hbm [shape: bf16[512,256], index: 3, kind: input, shape index: {}]   ;;  %s1258_s4 = inlined_call_operand.vmem [shape: f32[1,256], index: 4, kind: input, shape index: {}]   ;;  %s1259_s5 = inlined_call_operand.vmem [shape: bf16[256,64], index: 5, kind: input, shape index: {}]   ;;  %s1260_s6 = inlined_call_operand.vmem [shape: f32[1,64], index: 6, kind: input, shape index: {}]   ;;  %s1261_s7 = inlined_call_operand.vmem [shape: bf16[64,128], index: 7, kind: input, shape index: {}]   ;;  %s1262_s8 = inlined_call_operand.vmem [shape: f32[1,128], index: 8, kind: input, shape index: {}]   ;;  %s1263_s9 = inlined_call_operand.hbm [shape: f32[8,128], index: 9, kind: output, shape index: {}]  }
   0x1   :  { %15 = vsyncpa [#allocation4], 0  ;;  %s1066_s30 = smov [#allocation2]  }
   0x2   :  { %s27_s10 = sshll.u32 %s1066_s30, 4  ;;  %s28_s10 = int_to_ptr.vmem [resolvable:$true] %s27_s10 }
   0x3   :  { %s1030_s11 = scalar_lea.vmem %s28_s10, 8192  ;;  %p1035_p1 = scmp.lt.s32.totalorder %s28_s10, %s28_s10 }
   0x4   :  { %p1031_p0 = scmp.ne.s32.totalorder %s28_s10, %s1030_s11  ;;  %p1036_p2 = scmp.lt.s32.totalorder %s1030_s11, %s1030_s11 }
   0x6   :  { %p1037_p3 = por %p1036_p2, %p1035_p1 }
   0x8   :  { %p1038_p4 = pnand %p1037_p3, %p1031_p0 }
   0xa   :  { %1041 = shalt.err (!%p1038_p4)
}
   0xb   :  { %s1067_s12 = smov 128   ;;  %s1068_s13 = smov 8  }
   0xc   :  { %33 = dma.hbm_to_vmem [thread:$0]  %s1257_s3, 8192, %s28_s10, [#allocation3], %s1067_s12, %s1067_s12, %s1068_s13  }
   0xd   :  { %1062 = dma.done.wait [#allocation3], 8192  }
   0xe   :  { %1063 = vsyncadd [#allocation3], 4294959104  ;;  %v1069_v0 = vmov 0.0   ;;  %v54_v1 = vld [vmem:[%s1255_s1 + $0x30] sm:$0xff]  ;;  %v52_v2 = vld [vmem:[%s1255_s1 + $0x20] sm:$0xff]  ;;  %vm94_vm0 = vcmask 261120  }
   0xf   :  { %162 = vmatprep.mubr.f32.mxu1 %v1069_v0  ;;  %v50_v3 = vld [vmem:[%s1255_s1 + $0x10] sm:$0xff]  ;;  %v69_v4 = vunpack.c.h.bf16 %v54_v1  ;;  %v68_v5 = vunpack.c.l.bf16 %v54_v1  ;;  %v65_v6 = vunpack.c.h.bf16 %v52_v2  ;;  %v64_v7 = vunpack.c.l.bf16 %v52_v2  ;;  %v48_v8 = vld [vmem:[%s1255_s1] sm:$0xff]  ;;  %v259_v10 = vld [vmem:[#allocation2 + $0x78] sm:$0xff]  ;;  %s1071_s28 = smov [#allocation5]  }
  0x10   :  { %v61_v9 = vunpack.c.h.bf16 %v50_v3  ;;  %v258_v11 = vld [vmem:[#allocation2 + $0x70] sm:$0xff]  ;;  %v60_v12 = vunpack.c.l.bf16 %v50_v3  ;;  %v55_v13 = vld [vmem:[%s1255_s1 + $0x38] sm:$0xff]  ;;  %v57_v14 = vunpack.c.h.bf16 %v48_v8  ;;  %v339_v15 = vunpack.c.h.bf16 %v259_v10  ;;  %v53_v19 = vld [vmem:[%s1255_s1 + $0x28] sm:$0xff]  ;;  %s839_s29 = sshll.u32 %s1071_s28, 4  ;;  %s840_s29 = int_to_ptr.vmem [resolvable:$true] %s839_s29 }
  0x11   :  { %122 = vmatprep.subr.mxu1 %v69_v4  ;;  %v338_v16 = vunpack.c.l.bf16 %v259_v10  ;;  %v337_v17 = vunpack.c.h.bf16 %v258_v11  ;;  %v56_v18 = vunpack.c.l.bf16 %v48_v8  ;;  %v336_v20 = vunpack.c.l.bf16 %v258_v11  ;;  %v257_v21 = vld [vmem:[#allocation2 + $0x68] sm:$0xff]  ;;  %v47_v23 = vld [vmem:[%s1254_s0] sm:$0xff]  ;;  %v51_v25 = vld [vmem:[%s1255_s1 + $0x18] sm:$0xff]  ;;  %p1047_p6 = scmp.lt.s32.totalorder %s840_s29, %s840_s29 }
  0x12   :  { %123 = vmatpush1.msra.mxu1 %v68_v5  ;;  %v71_v22 = vunpack.c.h.bf16 %v55_v13  ;;  %448 = vmatprep.subr.mxu0 %v339_v15  ;;  %v70_v24 = vunpack.c.l.bf16 %v55_v13  ;;  %v256_v26 = vld [vmem:[#allocation2 + $0x60] sm:$0xff]  ;;  %v67_v27 = vunpack.c.h.bf16 %v53_v19  ;;  %v335_v28 = vunpack.c.h.bf16 %v257_v21  ;;  %v49_v30 = vld [vmem:[%s1255_s1 + $0x8] sm:$0xff]  ;;  %v255_v32 = vld [vmem:[#allocation2 + $0x58] sm:$0xff] }
  0x13   :  { %124 = vmatprep.subr.mxu1 %v65_v6  ;;  %449 = vmatpush1.msra.mxu0 %v338_v16  ;;  %v66_v29 = vunpack.c.l.bf16 %v53_v19  ;;  %v334_v31 = vunpack.c.l.bf16 %v257_v21  ;;  %v63_v33 = vunpack.c.h.bf16 %v51_v25  ;;  %v333_v34 = vunpack.c.h.bf16 %v256_v26  ;;  %v291_v37 = vld [vmem:[#allocation2 + $0x178] sm:$0xff]  ;;  %v254_v40 = vld [vmem:[#allocation2 + $0x50] sm:$0xff]  ;;  %v253_v45 = vld [vmem:[#allocation2 + $0x48] sm:$0xff] }
  0x14   :  { %125 = vmatpush1.msra.mxu1 %v64_v7  ;;  %450 = vmatprep.subr.mxu0 %v337_v17  ;;  %v62_v35 = vunpack.c.l.bf16 %v51_v25  ;;  %v332_v36 = vunpack.c.l.bf16 %v256_v26  ;;  %v59_v38 = vunpack.c.h.bf16 %v49_v30  ;;  %v331_v39 = vunpack.c.h.bf16 %v255_v32  ;;  %v290_v43 = vld [vmem:[#allocation2 + $0x170] sm:$0xff]  ;;  %v289_v48 = vld [vmem:[#allocation2 + $0x168] sm:$0xff]  ;;  %v252_v51 = vld [vmem:[#allocation2 + $0x40] sm:$0xff] }
  0x15   :  { %126 = vmatprep.subr.mxu1 %v61_v9  ;;  %451 = vmatpush1.msra.mxu0 %v336_v20  ;;  %v58_v41 = vunpack.c.l.bf16 %v49_v30  ;;  %v330_v42 = vunpack.c.l.bf16 %v255_v32  ;;  %v403_v44 = vunpack.c.h.bf16 %v291_v37  ;;  %v402_v46 = vunpack.c.l.bf16 %v291_v37  ;;  %v288_v54 = vld [vmem:[#allocation2 + $0x160] sm:$0xff]  ;;  %v251_v57 = vld [vmem:[#allocation2 + $0x38] sm:$0xff]  ;;  %v250_v63 = vld [vmem:[#allocation2 + $0x30] sm:$0xff] }
  0x16   :  { %127 = vmatpush1.msra.mxu1 %v60_v12  ;;  %452 = vmatprep.subr.mxu0 %v335_v28  ;;  %v329_v47 = vunpack.c.h.bf16 %v254_v40  ;;  %v401_v49 = vunpack.c.h.bf16 %v290_v43  ;;  %v328_v50 = vunpack.c.l.bf16 %v254_v40  ;;  %v400_v52 = vunpack.c.l.bf16 %v290_v43  ;;  %v287_v60 = vld [vmem:[#allocation2 + $0x158] sm:$0xff]  ;;  %v286_v3 = vld [vmem:[#allocation2 + $0x150] sm:$0xff]  ;;  %v249_v6 = vld [vmem:[#allocation2 + $0x28] sm:$0xff] }
  0x17   :  { %128 = vmatprep.subr.mxu1 %v57_v14  ;;  %453 = vmatpush1.msra.mxu0 %v334_v31  ;;  %v327_v53 = vunpack.c.h.bf16 %v253_v45  ;;  %v399_v55 = vunpack.c.h.bf16 %v289_v48  ;;  %v326_v56 = vunpack.c.l.bf16 %v253_v45  ;;  %v398_v58 = vunpack.c.l.bf16 %v289_v48  ;;  %v285_v9 = vld [vmem:[#allocation2 + $0x148] sm:$0xff]  ;;  %v248_v12 = vld [vmem:[#allocation2 + $0x20] sm:$0xff]  ;;  %v283_v21 = vld [vmem:[#allocation2 + $0x138] sm:$0xff] }
  0x18   :  { %129 = vmatpush1.msra.mxu1 %v56_v18  ;;  %454 = vmatprep.subr.mxu0 %v333_v34  ;;  %v325_v59 = vunpack.c.h.bf16 %v252_v51  ;;  %v397_v61 = vunpack.c.h.bf16 %v288_v54  ;;  %v324_v62 = vunpack.c.l.bf16 %v252_v51  ;;  %v396_v1 = vunpack.c.l.bf16 %v288_v54  ;;  %v284_v15 = vld [vmem:[#allocation2 + $0x140] sm:$0xff]  ;;  %v247_v18 = vld [vmem:[#allocation2 + $0x18] sm:$0xff]  ;;  %v245_v30 = vld [vmem:[#allocation2 + $0x8] sm:$0xff] }
  0x19   :  { %848 = vmatmul.mubr.msk.f32.vlgmr.msra.gmra.mxu1 %vm94_vm0, %v47_v23  ;;  %193 = vmatprep.subr.mxu1 %v71_v22  ;;  %v323_v2 = vunpack.c.h.bf16 %v251_v57  ;;  %v395_v4 = vunpack.c.h.bf16 %v287_v60  ;;  %v322_v5 = vunpack.c.l.bf16 %v251_v57  ;;  %v394_v7 = vunpack.c.l.bf16 %v287_v60  ;;  %v279_v45 = vld [vmem:[#allocation2 + $0x118] sm:$0xff]  ;;  %v274_v48 = vld [vmem:[#allocation2 + $0xf0] sm:$0xff]  ;;  %v273_v54 = vld [vmem:[#allocation2 + $0xe8] sm:$0xff] }
  0x1a   :  { %194 = vmatpush1.msra.mxu1 %v70_v24  ;;  %233 = vmatprep.mubr.f32.mxu1 %v1069_v0  ;;  %v321_v8 = vunpack.c.h.bf16 %v250_v63  ;;  %v393_v10 = vunpack.c.h.bf16 %v286_v3  ;;  %v320_v11 = vunpack.c.l.bf16 %v250_v63  ;;  %v392_v13 = vunpack.c.l.bf16 %v286_v3  ;;  %v246_v24 = vld [vmem:[#allocation2 + $0x10] sm:$0xff]  ;;  %v277_v57 = vld [vmem:[#allocation2 + $0x108] sm:$0xff]  ;;  %v272_v60 = vld [vmem:[#allocation2 + $0xe0] sm:$0xff] }
  0x1b   :  { %195 = vmatprep.subr.mxu1 %v67_v27  ;;  %455 = vmatpush1.msra.mxu0 %v332_v36  ;;  %v319_v14 = vunpack.c.h.bf16 %v249_v6  ;;  %v391_v16 = vunpack.c.h.bf16 %v285_v9  ;;  %v318_v17 = vunpack.c.l.bf16 %v249_v6  ;;  %v390_v19 = vunpack.c.l.bf16 %v285_v9  ;;  %v282_v27 = vld [vmem:[#allocation2 + $0x130] sm:$0xff]  ;;  %v244_v36 = vld [vmem:[#allocation2] sm:$0xff]  ;;  %v271_v3 = vld [vmem:[#allocation2 + $0xd8] sm:$0xff] }
  0x1c   :  { %196 = vmatpush1.msra.mxu1 %v66_v29  ;;  %456 = vmatprep.subr.mxu0 %v331_v39  ;;  %v317_v20 = vunpack.c.h.bf16 %v248_v12  ;;  %v389_v22 = vunpack.c.h.bf16 %v284_v15  ;;  %v388_v25 = vunpack.c.l.bf16 %v284_v15  ;;  %v315_v26 = vunpack.c.h.bf16 %v247_v18  ;;  %v280_v39 = vld [vmem:[#allocation2 + $0x120] sm:$0xff]  ;;  %v278_v51 = vld [vmem:[#allocation2 + $0x110] sm:$0xff]  ;;  %v307_v6 = vld [vmem:[#allocation2 + $0x1f8] sm:$0xff] }
  0x1d   :  { %197 = vmatprep.subr.mxu1 %v63_v33  ;;  %457 = vmatpush1.msra.mxu0 %v330_v42  ;;  %v387_v28 = vunpack.c.h.bf16 %v283_v21  ;;  %v314_v29 = vunpack.c.l.bf16 %v247_v18  ;;  %v386_v31 = vunpack.c.l.bf16 %v283_v21  ;;  %v313_v32 = vunpack.c.h.bf16 %v246_v24  ;;  %v281_v33 = vld [vmem:[#allocation2 + $0x128] sm:$0xff]  ;;  %v275_v42 = vld [vmem:[#allocation2 + $0xf8] sm:$0xff]  ;;  %v276_v63 = vld [vmem:[#allocation2 + $0x100] sm:$0xff] }
  0x1e   :  { %198 = vmatpush1.msra.mxu1 %v62_v35  ;;  %458 = vmatprep.subr.mxu0 %v329_v47  ;;  %v385_v34 = vunpack.c.h.bf16 %v282_v27  ;;  %v312_v35 = vunpack.c.l.bf16 %v246_v24  ;;  %v384_v37 = vunpack.c.l.bf16 %v282_v27  ;;  %v383_v40 = vunpack.c.h.bf16 %v281_v33  ;;  %v270_v9 = vld [vmem:[#allocation2 + $0xd0] sm:$0xff]  ;;  %v269_v15 = vld [vmem:[#allocation2 + $0xc8] sm:$0xff]  ;;  %v268_v21 = vld [vmem:[#allocation2 + $0xc0] sm:$0xff] }
  0x1f   :  { %199 = vmatprep.subr.mxu1 %v59_v38  ;;  %459 = vmatpush1.msra.mxu0 %v328_v50  ;;  %v311_v38 = vunpack.c.h.bf16 %v245_v30  ;;  %v382_v43 = vunpack.c.l.bf16 %v281_v33  ;;  %v308_v47 = vunpack.c.l.bf16 %v244_v36  ;;  %v371_v50 = vunpack.c.h.bf16 %v275_v42  ;;  %v305_v18 = vld [vmem:[#allocation2 + $0x1e8] sm:$0xff]  ;;  %v304_v24 = vld [vmem:[#allocation2 + $0x1e0] sm:$0xff]  ;;  %v267_v27 = vld [vmem:[#allocation2 + $0xb8] sm:$0xff] }
  0x20   :  { %200 = vmatpush1.msra.mxu1 %v58_v41  ;;  %460 = vmatprep.subr.mxu0 %v327_v53  ;;  %v310_v41 = vunpack.c.l.bf16 %v245_v30  ;;  %v370_v53 = vunpack.c.l.bf16 %v275_v42  ;;  %v303_v30 = vld [vmem:[#allocation2 + $0x1d8] sm:$0xff]  ;;  %v266_v33 = vld [vmem:[#allocation2 + $0xb0] sm:$0xff]  ;;  %v301_v42 = vld [vmem:[#allocation2 + $0x1c8] sm:$0xff]  ;;  %vm1070_vm1 = vmmov 0   ;;  %vm757_vm2 = vcmask 523264  }
  0x21   :  { %849 = vmatmul.mubr.msk.f32.vlgmr.msra.gmra.mxu1 %vm94_vm0, %v47_v23  ;;  %519 = vmatprep.subr.mxu1 %v403_v44  ;;  %v316_v23 = vunpack.c.l.bf16 %v248_v12  ;;  %v309_v44 = vunpack.c.h.bf16 %v244_v36  ;;  %v306_v12 = vld [vmem:[#allocation2 + $0x1f0] sm:$0xff] }
  0x22   :  { %520 = vmatpush1.msra.mxu1 %v402_v46  ;;  %461 = vmatpush1.msra.mxu0 %v326_v56  ;;  %v381_v46 = vunpack.c.h.bf16 %v280_v39  ;;  %v369_v56 = vunpack.c.h.bf16 %v274_v48  ;;  %v302_v36 = vld [vmem:[#allocation2 + $0x1d0] sm:$0xff] }
  0x23   :  { %521 = vmatprep.subr.mxu1 %v401_v49  ;;  %462 = vmatprep.subr.mxu0 %v325_v59  ;;  %v380_v49 = vunpack.c.l.bf16 %v280_v39  ;;  %v368_v59 = vunpack.c.l.bf16 %v274_v48  ;;  %v265_v39 = vld [vmem:[#allocation2 + $0xa8] sm:$0xff]  ;;  %v300_v48 = vld [vmem:[#allocation2 + $0x1c0] sm:$0xff] }
  0x24   :  { %522 = vmatpush1.msra.mxu1 %v400_v52  ;;  %463 = vmatpush1.msra.mxu0 %v324_v62  ;;  %v379_v52 = vunpack.c.h.bf16 %v279_v45  ;;  %v367_v62 = vunpack.c.h.bf16 %v273_v54 }
  0x25   :  { %523 = vmatprep.subr.mxu1 %v399_v55  ;;  %464 = vmatprep.subr.mxu0 %v323_v2  ;;  %v378_v55 = vunpack.c.l.bf16 %v279_v45  ;;  %v366_v2 = vunpack.c.l.bf16 %v273_v54  ;;  %v264_v45 = vld [vmem:[#allocation2 + $0xa0] sm:$0xff] }
  0x26   :  { %524 = vmatpush1.msra.mxu1 %v398_v58  ;;  %465 = vmatpush1.msra.mxu0 %v322_v5  ;;  %v377_v58 = vunpack.c.h.bf16 %v278_v51  ;;  %v365_v5 = vunpack.c.h.bf16 %v272_v60  ;;  %v348_v54 = vunpack.c.l.bf16 %v264_v45 }
  0x27   :  { %525 = vmatprep.subr.mxu1 %v397_v61  ;;  %466 = vmatprep.subr.mxu0 %v321_v8  ;;  %v376_v61 = vunpack.c.l.bf16 %v278_v51  ;;  %v364_v8 = vunpack.c.l.bf16 %v272_v60  ;;  %v422_v51 = vunpack.c.l.bf16 %v301_v42 }
  0x28   :  { %526 = vmatpush1.msra.mxu1 %v396_v1  ;;  %467 = vmatpush1.msra.mxu0 %v320_v11  ;;  %v375_v1 = vunpack.c.h.bf16 %v277_v57  ;;  %v363_v11 = vunpack.c.h.bf16 %v271_v3 }
  0x29   :  { %527 = vmatprep.subr.mxu1 %v395_v4  ;;  %468 = vmatprep.subr.mxu0 %v319_v14  ;;  %v374_v4 = vunpack.c.l.bf16 %v277_v57  ;;  %v362_v14 = vunpack.c.l.bf16 %v271_v3  ;;  %v299_v57 = vld [vmem:[#allocation2 + $0x1b8] sm:$0xff] }
  0x2a   :  { %528 = vmatpush1.msra.mxu1 %v394_v7  ;;  %469 = vmatpush1.msra.mxu0 %v318_v17  ;;  %v373_v7 = vunpack.c.h.bf16 %v276_v63  ;;  %v361_v17 = vunpack.c.h.bf16 %v270_v9  ;;  %v418_v60 = vunpack.c.l.bf16 %v299_v57 }
  0x2b   :  { %529 = vmatprep.subr.mxu1 %v393_v10  ;;  %470 = vmatprep.subr.mxu0 %v317_v20  ;;  %v372_v10 = vunpack.c.l.bf16 %v276_v63  ;;  %v360_v20 = vunpack.c.l.bf16 %v270_v9  ;;  %v298_v63 = vld [vmem:[#allocation2 + $0x1b0] sm:$0xff] }
  0x2c   :  { %530 = vmatpush1.msra.mxu1 %v392_v13  ;;  %471 = vmatpush1.msra.mxu0 %v316_v23  ;;  %v435_v13 = vunpack.c.h.bf16 %v307_v6  ;;  %v359_v23 = vunpack.c.h.bf16 %v269_v15  ;;  %v416_v3 = vunpack.c.l.bf16 %v298_v63 }
  0x2d   :  { %531 = vmatprep.subr.mxu1 %v391_v16  ;;  %472 = vmatprep.subr.mxu0 %v315_v26  ;;  %v434_v16 = vunpack.c.l.bf16 %v307_v6  ;;  %v358_v26 = vunpack.c.l.bf16 %v269_v15  ;;  %v297_v6 = vld [vmem:[#allocation2 + $0x1a8] sm:$0xff] }
  0x2e   :  { %532 = vmatpush1.msra.mxu1 %v390_v19  ;;  %473 = vmatpush1.msra.mxu0 %v314_v29  ;;  %v433_v19 = vunpack.c.h.bf16 %v306_v12  ;;  %v357_v29 = vunpack.c.h.bf16 %v268_v21  ;;  %v414_v9 = vunpack.c.l.bf16 %v297_v6 }
  0x2f   :  { %533 = vmatprep.subr.mxu1 %v389_v22  ;;  %474 = vmatprep.subr.mxu0 %v313_v32  ;;  %v432_v22 = vunpack.c.l.bf16 %v306_v12  ;;  %v356_v32 = vunpack.c.l.bf16 %v268_v21  ;;  %v296_v12 = vld [vmem:[#allocation2 + $0x1a0] sm:$0xff] }
  0x30   :  { %534 = vmatpush1.msra.mxu1 %v388_v25  ;;  %475 = vmatpush1.msra.mxu0 %v312_v35  ;;  %v431_v25 = vunpack.c.h.bf16 %v305_v18  ;;  %v355_v35 = vunpack.c.h.bf16 %v267_v27  ;;  %v413_v15 = vunpack.c.h.bf16 %v296_v12 }
  0x31   :  { %535 = vmatprep.subr.mxu1 %v387_v28  ;;  %476 = vmatprep.subr.mxu0 %v311_v38  ;;  %v430_v28 = vunpack.c.l.bf16 %v305_v18  ;;  %v354_v38 = vunpack.c.l.bf16 %v267_v27 }
  0x32   :  { %536 = vmatpush1.msra.mxu1 %v386_v31  ;;  %477 = vmatpush1.msra.mxu0 %v310_v41  ;;  %v429_v31 = vunpack.c.h.bf16 %v304_v24  ;;  %v353_v41 = vunpack.c.h.bf16 %v266_v33 }
  0x33   :  { %537 = vmatprep.subr.mxu1 %v385_v34  ;;  %478 = vmatprep.subr.mxu0 %v309_v44  ;;  %v428_v34 = vunpack.c.l.bf16 %v304_v24  ;;  %v352_v44 = vunpack.c.l.bf16 %v266_v33 }
  0x34   :  { %538 = vmatpush1.msra.mxu1 %v384_v37  ;;  %479 = vmatpush1.msra.mxu0 %v308_v47  ;;  %v427_v37 = vunpack.c.h.bf16 %v303_v30  ;;  %v351_v47 = vunpack.c.h.bf16 %v265_v39 }
  0x35   :  { %539 = vmatprep.subr.mxu1 %v383_v40  ;;  %480 = vmatprep.subr.mxu0 %v371_v50  ;;  %v426_v40 = vunpack.c.l.bf16 %v303_v30  ;;  %v350_v50 = vunpack.c.l.bf16 %v265_v39 }
  0x36   :  { %540 = vmatpush1.msra.mxu1 %v382_v43  ;;  %481 = vmatpush2.msra.mxu0 %v370_v53  ;;  %v425_v43 = vunpack.c.h.bf16 %v302_v36  ;;  %v421_v53 = vunpack.c.h.bf16 %v300_v48 }
  0x37   :  { %541 = vmatprep.subr.mxu1 %v381_v46  ;;  %482 = vmatprep.subr.mxu0 %v369_v56  ;;  %v424_v46 = vunpack.c.l.bf16 %v302_v36  ;;  %v263_v56 = vld [vmem:[#allocation2 + $0x98] sm:$0xff] }
  0x38   :  { %542 = vmatpush1.msra.mxu1 %v380_v49  ;;  %483 = vmatpush2.msra.mxu0 %v368_v59  ;;  %v423_v49 = vunpack.c.h.bf16 %v301_v42  ;;  %v419_v59 = vunpack.c.h.bf16 %v299_v57  ;;  %v939_v42 = vld [vmem:[%s1259_s5 + $0x38] sm:$0xff]   ;;  %v945_v57 = vld [vmem:[%s1259_s5 + $0x68] sm:$0xff]  }
  0x39   :  { %543 = vmatprep.subr.mxu1 %v379_v52  ;;  %484 = vmatprep.subr.mxu0 %v367_v62  ;;  %v349_v52 = vunpack.c.h.bf16 %v264_v45  ;;  %v262_v62 = vld [vmem:[#allocation2 + $0x90] sm:$0xff] }
  0x3a   :  { %544 = vmatpush1.msra.mxu1 %v378_v55  ;;  %485 = vmatpush2.msra.mxu0 %v366_v2  ;;  %v420_v55 = vunpack.c.l.bf16 %v300_v48  ;;  %v417_v2 = vunpack.c.h.bf16 %v298_v63 }
  0x3b   :  { %545 = vmatprep.subr.mxu1 %v377_v58  ;;  %486 = vmatprep.subr.mxu0 %v365_v5  ;;  %v347_v58 = vunpack.c.h.bf16 %v263_v56  ;;  %v261_v5 = vld [vmem:[#allocation2 + $0x88] sm:$0xff] }
  0x3c   :  { %546 = vmatpush1.msra.mxu1 %v376_v61  ;;  %487 = vmatpush2.msra.mxu0 %v364_v8  ;;  %v346_v61 = vunpack.c.l.bf16 %v263_v56  ;;  %v415_v8 = vunpack.c.h.bf16 %v297_v6  ;;  %v907_v6 = vunpack.c.l.bf16 %v945_v57 }
  0x3d   :  { %547 = vmatprep.subr.mxu1 %v375_v1  ;;  %488 = vmatprep.subr.mxu0 %v363_v11  ;;  %v345_v1 = vunpack.c.h.bf16 %v262_v62  ;;  %v260_v11 = vld [vmem:[#allocation2 + $0x80] sm:$0xff] }
  0x3e   :  { %548 = vmatpush1.msra.mxu1 %v374_v4  ;;  %489 = vmatpush2.msra.mxu0 %v362_v14  ;;  %v344_v4 = vunpack.c.l.bf16 %v262_v62  ;;  %v412_v14 = vunpack.c.l.bf16 %v296_v12 }
  0x3f   :  { %549 = vmatprep.subr.mxu1 %v373_v7  ;;  %490 = vmatprep.subr.mxu0 %v361_v17  ;;  %v343_v7 = vunpack.c.h.bf16 %v261_v5  ;;  %v295_v17 = vld [vmem:[#allocation2 + $0x198] sm:$0xff] }
  0x40   :  { %550 = vmatpush1.msra.mxu1 %v372_v10  ;;  %491 = vmatpush2.msra.mxu0 %v360_v20  ;;  %v342_v10 = vunpack.c.l.bf16 %v261_v5  ;;  %v411_v18 = vunpack.c.h.bf16 %v295_v17  ;;  %v294_v20 = vld [vmem:[#allocation2 + $0x190] sm:$0xff] }
  0x41   :  { %551 = vmatprep.subr.mxu1 %v435_v13  ;;  %492 = vmatprep.subr.mxu0 %v359_v23  ;;  %v341_v13 = vunpack.c.h.bf16 %v260_v11  ;;  %v409_v21 = vunpack.c.h.bf16 %v294_v20  ;;  %v293_v23 = vld [vmem:[#allocation2 + $0x188] sm:$0xff] }
  0x42   :  { %552 = vmatpush2.msra.mxu1 %v434_v16  ;;  %493 = vmatpush2.msra.mxu0 %v358_v26  ;;  %v340_v16 = vunpack.c.l.bf16 %v260_v11  ;;  %v407_v24 = vunpack.c.h.bf16 %v293_v23  ;;  %v292_v26 = vld [vmem:[#allocation2 + $0x180] sm:$0xff] }
  0x43   :  { %553 = vmatprep.subr.mxu1 %v433_v19  ;;  %494 = vmatprep.subr.mxu0 %v357_v29  ;;  %v410_v19 = vunpack.c.l.bf16 %v295_v17  ;;  %v405_v27 = vunpack.c.h.bf16 %v292_v26  ;;  %v947_v29 = vld [vmem:[%s1259_s5 + $0x78] sm:$0xff]  }
  0x44   :  { %554 = vmatpush2.msra.mxu1 %v432_v22  ;;  %495 = vmatpush2.msra.mxu0 %v356_v32  ;;  %v408_v22 = vunpack.c.l.bf16 %v294_v20  ;;  %v916_v30 = vunpack.c.h.bf16 %v947_v29 }
  0x45   :  { %555 = vmatprep.subr.mxu1 %v431_v25  ;;  %496 = vmatprep.subr.mxu0 %v355_v35  ;;  %v406_v25 = vunpack.c.l.bf16 %v293_v23 }
  0x46   :  { %556 = vmatpush2.msra.mxu1 %v430_v28  ;;  %497 = vmatpush2.msra.mxu0 %v354_v38  ;;  %v404_v28 = vunpack.c.l.bf16 %v292_v26 }
  0x47   :  { %557 = vmatprep.subr.mxu1 %v429_v31  ;;  %498 = vmatprep.subr.mxu0 %v353_v41  ;;  %v74_v31 = vlaneseq }
  0x48   :  { %558 = vmatpush2.msra.mxu1 %v428_v34  ;;  %499 = vmatpush2.msra.mxu0 %v352_v44  ;;  %v72_v34 = vld [vmem:[%s1256_s2] sm:$0xf] }
  0x49   :  { %559 = vmatprep.subr.mxu1 %v427_v37  ;;  %500 = vmatprep.subr.mxu0 %v351_v47  ;;  %v1160_v32 = vshrl.u32 %v74_v31, 7  ;;  %v946_v47 = vld [vmem:[%s1259_s5 + $0x70] sm:$0xff]   ;;  %v940_v31 = vld [vmem:[%s1259_s5 + $0x40] sm:$0xff]  }
  0x4a   :  { %560 = vmatpush2.msra.mxu1 %v426_v40  ;;  %501 = vmatpush2.msra.mxu0 %v350_v50  ;;  %v915_v50 = vunpack.c.l.bf16 %v947_v29 }
  0x4b   :  { %561 = vmatprep.subr.mxu1 %v425_v43  ;;  %502 = vmatprep.subr.mxu0 %v349_v52  ;;  %v76_v33 = vsub.s32 0, %v1160_v32  ;;  %v80_v35 = vsub.s32 1, %v1160_v32  ;;  %v84_v41 = vsub.s32 2, %v1160_v32  ;;  %v88_v44 = vsub.s32 3, %v1160_v32 }
  0x4c   :  { %562 = vmatpush2.msra.mxu1 %v424_v46  ;;  %503 = vmatpush2.msra.mxu0 %v348_v54  ;;  %v884_v46 = vunpack.c.h.bf16 %v939_v42 }
  0x4d   :  { %563 = vmatprep.subr.mxu1 %v423_v49  ;;  %504 = vmatprep.subr.mxu0 %v347_v58  ;;  %v77_v36 = vrot.slane %v72_v34, %v76_v33  ;;  %v81_v37 = vrot.slane %v72_v34, %v80_v35  ;;  %v85_v49 = vrot.slane %v72_v34, %v84_v41  ;;  %v949_v41 = vld [vmem:[%s1261_s7 + $0x10] sm:$0xff]  }
  0x4e   :  { %564 = vmatpush2.msra.mxu1 %v422_v51  ;;  %505 = vmatpush2.msra.mxu0 %v346_v61  ;;  %v938_v51 = vld [vmem:[%s1259_s5 + $0x30] sm:$0xff]   ;;  %v89_v52 = vrot.slane %v72_v34, %v88_v44  ;;  %v937_v61 = vld [vmem:[%s1259_s5 + $0x28] sm:$0xff]   ;;  %v888_v34 = vunpack.c.h.bf16 %v940_v31  ;;  %v928_v44 = vunpack.c.h.bf16 %v949_v41 }
  0x4f   :  { %565 = vmatprep.subr.mxu1 %v421_v53  ;;  %506 = vmatprep.subr.mxu0 %v345_v1  ;;  %v883_v53 = vunpack.c.l.bf16 %v939_v42  ;;  %v880_v56 = vunpack.c.h.bf16 %v938_v51  ;;  %v879_v63 = vunpack.c.l.bf16 %v938_v51  ;;  %v908_v1 = vunpack.c.h.bf16 %v945_v57 }
  0x50   :  { %566 = vmatpush2.msra.mxu1 %v420_v55  ;;  %507 = vmatpush2.msra.mxu0 %v344_v4  ;;  %v912_v55 = vunpack.c.h.bf16 %v946_v47  ;;  %v944_v4 = vld [vmem:[%s1259_s5 + $0x60] sm:$0xff]  }
  0x51   :  { %567 = vmatprep.subr.mxu1 %v419_v59  ;;  %508 = vmatprep.subr.mxu0 %v343_v7  ;;  %v936_v7 = vld [vmem:[%s1259_s5 + $0x20] sm:$0xff]   ;;  %v903_v11 = vunpack.c.l.bf16 %v944_v4 }
  0x52   :  { %568 = vmatpush2.msra.mxu1 %v418_v60  ;;  %509 = vmatpush2.msra.mxu0 %v342_v10  ;;  %v911_v60 = vunpack.c.l.bf16 %v946_v47  ;;  %v872_v10 = vunpack.c.h.bf16 %v936_v7  ;;  %v871_v12 = vunpack.c.l.bf16 %v936_v7 }
  0x53   :  { %569 = vmatprep.subr.mxu1 %v417_v2  ;;  %510 = vmatprep.subr.mxu0 %v341_v13  ;;  %v943_v13 = vld [vmem:[%s1259_s5 + $0x58] sm:$0xff]  }
  0x54   :  { %570 = vmatpush2.msra.mxu1 %v416_v3  ;;  %511 = vmatpush2.msra.mxu0 %v340_v16  ;;  %v876_v3 = vunpack.c.h.bf16 %v937_v61  ;;  %v899_v17 = vunpack.c.l.bf16 %v943_v13 }
  0x55   :  { %571 = vmatprep.subr.mxu1 %v415_v8  ;;  %951 = vmatprep.subr.mxu0 %v916_v30  ;;  %v875_v8 = vunpack.c.l.bf16 %v937_v61 }
  0x56   :  { %572 = vmatpush2.msra.mxu1 %v414_v9  ;;  %v904_v9 = vunpack.c.h.bf16 %v944_v4 }
  0x57   :  { %573 = vmatprep.subr.mxu1 %v413_v15  ;;  %v935_v15 = vld [vmem:[%s1259_s5 + $0x18] sm:$0xff]  }
  0x58   :  { %574 = vmatpush2.msra.mxu1 %v412_v14  ;;  %v900_v14 = vunpack.c.h.bf16 %v943_v13  ;;  %v868_v16 = vunpack.c.h.bf16 %v935_v15 }
  0x59   :  { %575 = vmatprep.subr.mxu1 %v411_v18  ;;  %v867_v18 = vunpack.c.l.bf16 %v935_v15 }
  0x5a   :  { %576 = vmatpush2.msra.mxu1 %v410_v19  ;;  %v942_v19 = vld [vmem:[%s1259_s5 + $0x50] sm:$0xff]  }
  0x5b   :  { %577 = vmatprep.subr.mxu1 %v409_v21  ;;  %v896_v20 = vunpack.c.h.bf16 %v942_v19  ;;  %v934_v21 = vld [vmem:[%s1259_s5 + $0x10] sm:$0xff]   ;;  %v895_v23 = vunpack.c.l.bf16 %v942_v19 }
  0x5c   :  { %578 = vmatpush2.msra.mxu1 %v408_v22  ;;  %v864_v22 = vunpack.c.h.bf16 %v934_v21 }
  0x5d   :  { %579 = vmatprep.subr.mxu1 %v407_v24  ;;  %v863_v24 = vunpack.c.l.bf16 %v934_v21 }
  0x5e   :  { %580 = vmatpush2.msra.mxu1 %v406_v25  ;;  %v941_v25 = vld [vmem:[%s1259_s5 + $0x48] sm:$0xff]  }
  0x5f   :  { %581 = vmatprep.subr.mxu1 %v405_v27  ;;  %v892_v26 = vunpack.c.h.bf16 %v941_v25  ;;  %v933_v27 = vld [vmem:[%s1259_s5 + $0x8] sm:$0xff]   ;;  %v891_v29 = vunpack.c.l.bf16 %v941_v25 }
  0x60   :  { %582 = vmatpush2.msra.mxu1 %v404_v28  ;;  %v860_v28 = vunpack.c.h.bf16 %v933_v27  ;;  %v859_v30 = vunpack.c.l.bf16 %v933_v27 }
  0x61   :  { %995 = vmatprep.subr.mxu1 %v1069_v0 }
  0xd9   :  { %v164_v38 = vpop.f32.mrf.mxu1 }
  0xda   :  { %v165_v39 = vadd.f32 %v164_v38, %v77_v36  ;;  %v854_v36 = vld [vmem:[%s1259_s5] sm:$0xff]   ;;  %v887_v38 = vunpack.c.l.bf16 %v940_v31 }
  0xdb   :  { %v166_v40 = vpop.f32.mrf.mxu1 }
  0xdc   :  { %v167_v43 = vadd.f32 %v166_v40, %v81_v37  ;;  %v240_v48 = vmax.f32 %v165_v39, 0.0  ;;  %v856_v37 = vunpack.c.h.bf16 %v854_v36  ;;  %v855_v39 = vunpack.c.l.bf16 %v854_v36  ;;  %v950_v40 = vld [vmem:[%s1261_s7 + $0x18] sm:$0xff]  }
  0xdd   :  { %v932_v42 = vunpack.c.h.bf16 %v950_v40 }
  0xde   :  { %v241_v45 = vmax.f32 %v167_v43, 0.0  ;;  %v931_v43 = vunpack.c.l.bf16 %v950_v40 }
  0xe0   :  { %512 = vmatprep.mubr.f32.mxu0 %v241_v45  ;;  %v436_v45 = vld [vmem:[%s1258_s4] sm:$0x3] }
  0xe1   :  { %v235_v54 = vpop.f32.mrf.mxu1  ;;  %513 = vmatmul.mubr.f32.vlgmr.msra.gmra.mxu0 %v240_v48  ;;  %v441_v47 = vrot.slane %v436_v45, %v76_v33  ;;  %v445_v48 = vrot.slane %v436_v45, %v80_v35  ;;  %v918_v35 = vld [vmem:[%s1261_s7] sm:$0xff]  }
  0xe2   :  { %952 = vmatpush3.msra.mxu0 %v884_v46  ;;  %v236_v58 = vadd.f32 %v235_v54, %v85_v49  ;;  %v919_v61 = vunpack.c.l.bf16 %v918_v35 }
  0xe3   :  { %v237_v59 = vpop.f32.mrf.mxu1  ;;  %953 = vmatprep.subr.mxu0 %v915_v50 }
  0xe4   :  { %v238_v62 = vadd.f32 %v237_v59, %v89_v52  ;;  %954 = vmatpush3.msra.mxu0 %v883_v53  ;;  %v242_v5 = vmax.f32 %v236_v58, 0.0  ;;  %v927_v58 = vunpack.c.l.bf16 %v949_v41  ;;  %v948_v59 = vld [vmem:[%s1261_s7 + $0x8] sm:$0xff]  }
  0xe5   :  { %955 = vmatprep.subr.mxu0 %v912_v55  ;;  %v924_v33 = vunpack.c.h.bf16 %v948_v59  ;;  %v923_v32 = vunpack.c.l.bf16 %v948_v59 }
  0xe6   :  { %v243_v2 = vmax.f32 %v238_v62, 0.0  ;;  %956 = vmatpush3.msra.mxu0 %v880_v56 }
  0xe7   :  { %957 = vmatprep.subr.mxu0 %v911_v60  ;;  %v920_v60 = vunpack.c.h.bf16 %v918_v35 }
  0xe8   :  { %583 = vmatprep.mubr.f32.mxu1 %v243_v2  ;;  %958 = vmatpush3.msra.mxu0 %v879_v63  ;;  %v850_v63 = vld [vmem:[%s1260_s6] ss:$0 sm:$0xff]  ;;  %s1042_s6 = scalar_lea.vmem %s840_s29, 128 }
  0xe9   :  { %584 = vmatmul.mubr.f32.vlgmr.msra.gmra.mxu1 %v242_v5  ;;  %959 = vmatprep.subr.mxu0 %v908_v1  ;;  %v851_v5 = vld [vmem:[%s1262_s8] ss:$0 sm:$0xff]  ;;  %p1043_p5 = scmp.ne.s32.totalorder %s840_s29, %s1042_s6  ;;  %p1048_p7 = scmp.lt.s32.totalorder %s1042_s6, %s1042_s6 }
  0xea   :  { %960 = vmatpush3.msra.mxu0 %v876_v3  ;;  %996 = vmatpush3.msra.mxu1 %v932_v42 }
  0xeb   :  { %961 = vmatprep.subr.mxu0 %v907_v6  ;;  %997 = vmatprep.subr.mxu1 %v1069_v0  ;;  %p1049_p8 = por %p1048_p7, %p1047_p6 }
  0xec   :  { %962 = vmatpush3.msra.mxu0 %v875_v8  ;;  %998 = vmatpush3.msra.mxu1 %v931_v43 }
  0xed   :  { %963 = vmatprep.subr.mxu0 %v904_v9  ;;  %999 = vmatprep.subr.mxu1 %v1069_v0  ;;  %p1050_p9 = pnand %p1049_p8, %p1043_p5 }
  0xee   :  { %964 = vmatpush3.msra.mxu0 %v872_v10  ;;  %1000 = vmatpush3.msra.mxu1 %v928_v44 }
  0xef   :  { %965 = vmatprep.subr.mxu0 %v903_v11  ;;  %1001 = vmatprep.subr.mxu1 %v1069_v0 }
  0xf0   :  { %966 = vmatpush3.msra.mxu0 %v871_v12  ;;  %1002 = vmatpush3.msra.mxu1 %v927_v58 }
  0xf1   :  { %967 = vmatprep.subr.mxu0 %v900_v14  ;;  %1003 = vmatprep.subr.mxu1 %v1069_v0 }
  0xf2   :  { %968 = vmatpush3.msra.mxu0 %v868_v16  ;;  %1004 = vmatpush3.msra.mxu1 %v924_v33 }
  0xf3   :  { %969 = vmatprep.subr.mxu0 %v899_v17  ;;  %1005 = vmatprep.subr.mxu1 %v1069_v0 }
  0xf4   :  { %970 = vmatpush3.msra.mxu0 %v867_v18  ;;  %1006 = vmatpush3.msra.mxu1 %v923_v32 }
  0xf5   :  { %971 = vmatprep.subr.mxu0 %v896_v20  ;;  %1007 = vmatprep.subr.mxu1 %v1069_v0 }
  0xf6   :  { %972 = vmatpush3.msra.mxu0 %v864_v22  ;;  %1008 = vmatpush3.msra.mxu1 %v920_v60 }
  0xf7   :  { %973 = vmatprep.subr.mxu0 %v895_v23  ;;  %1009 = vmatprep.subr.mxu1 %v1069_v0 }
  0xf8   :  { %974 = vmatpush3.msra.mxu0 %v863_v24  ;;  %1010 = vmatpush3.msra.mxu1 %v919_v61 }
  0xf9   :  { %975 = vmatprep.subr.mxu0 %v892_v26  ;;  %1011 = vmatprep.mubr.msk.f32.mxu1 %vm1070_vm1, %v1069_v0 }
  0xfa   :  { %976 = vmatpush3.msra.mxu0 %v860_v28 }
  0xfb   :  { %977 = vmatprep.subr.mxu0 %v891_v29 }
  0xfc   :  { %978 = vmatpush3.msra.mxu0 %v859_v30 }
  0xfd   :  { %979 = vmatprep.subr.mxu0 %v888_v34 }
  0xfe   :  { %980 = vmatpush3.msra.mxu0 %v856_v37 }
  0xff   :  { %981 = vmatprep.subr.mxu0 %v887_v38 }
 0x100   :  { %982 = vmatpush3.msra.mxu0 %v855_v39 }
 0x1a1   :  { %v514_v46 = vpop.f32.mrf.mxu0 }
 0x1a2   :  { %v515_v50 = vadd.f32 %v514_v46, %v441_v47 }
 0x1a3   :  { %v516_v49 = vpop.f32.mrf.mxu0 }
 0x1a4   :  { %v517_v52 = vadd.f32 %v516_v49, %v445_v48 }
 0x1a9   :  { %v585_v51 = vpop.f32.mrf.mxu1 }
 0x1aa   :  { %v586_v53 = vadd.f32 %v585_v51, %v515_v50 }
 0x1ab   :  { %v587_v54 = vpop.f32.mrf.mxu1 }
 0x1ac   :  { %v588_v55 = vadd.f32 %v587_v54, %v517_v52  ;;  %v590_v57 = vmax.f32 %v586_v53, 0.0 }
 0x1ae   :  { %v591_v56 = vmax.f32 %v588_v55, 0.0 }
 0x1b0   :  { %727 = vmatprep.mubr.f32.mxu0 %v591_v56 }
 0x1b1   :  { %728 = vmatmul.mubr.f32.vlgmr.msra.gmra.mxu0 %v590_v57 }
 0x271   :  { %v983_v62 = vpop.f32.mrf.mxu0 }
 0x273   :  { %v984_v1 = vpop.f32.mrf.mxu0 }
 0x274   :  { %v985_v2 = vadd.f32 %v984_v1, %v983_v62 }
 0x276   :  { %v730_v3 = vadd.f32 %v985_v2, %v850_v63 }
 0x278   :  { %v733_v4 = vmax.f32 %v730_v3, 0.0 }
 0x27a   :  { %1012 = vmatmul.mubr.msk.f32.vlgmr.msra.gmra.mxu1 %vm757_vm2, %v733_v4 }
 0x33a   :  { %v827_v6 = vpop.f32.mrf.mxu1 }
 0x33b   :  { %v828_v7 = vadd.f32 %v851_v5, %v827_v6 }
 0x33c   :  { %v1013_v8 = vpop.f32.mrf.mxu1 }
 0x33d   :  { %1020 = vtanh.f32 %v828_v7 }
 0x34a   :  { %v1021_v0 = vpop.eup %1020 }
 0x34b   :  { %832 = vst [vmem:[#allocation5] sm:$0xff] %v1021_v0 }
 0x34c   :  { %1053 = shalt.err (!%p1050_p9)
}
 0x34d   :  { %842 = dma.vmem_to_hbm [thread:$0]  %s840_s29, 128, %s1263_s9, [#allocation4]  }
 0x34e   :  { %1064 = dma.done.wait [#allocation4], 128  }
 0x34f   :  { %1065 = vsyncadd [#allocation4], 4294967168 }
 0x350   :  { %846 = vsyncpa [#allocation3], 1 }
 0x351   :  { %847 = vsyncpa [#allocation4], 1 }

</bundles_post_ra>
